<compile_context>
chip_gen: v7x
topology: tpu7x:2x2x1
jax: 0.10.0
libtpu: 0.0.40
codegen_flags: <defaults>
</compile_context>

<pallas_src>
import jax
import jax.numpy as jnp
from jax.experimental import pallas as pl
from jax.experimental.pallas import tpu as pltpu


LANE = 128                       # TPU lane width: pad hidden dim to this.
_GRIDLESS_BYTES = 4 << 20        # below this total footprint, skip the grid.


def _round_up(x, m):
    return ((x + m - 1) // m) * m


def _map_learner_kernel(s_ref, a_ref, ws_ref, wa_ref, o_ref):
    # out = state @ W_state^T + action @ W_action^T, f32 MXU accumulation,
    # single lane-dense store.
    acc = jnp.dot(s_ref[...], ws_ref[...], preferred_element_type=jnp.float32)
    acc = acc + jnp.dot(a_ref[...], wa_ref[...],
                        preferred_element_type=jnp.float32)
    o_ref[...] = acc.astype(o_ref.dtype)


def linear_map_learner_forward(state, action, w_state_t, w_action_t,
                               hidden_dim=None, *, tb=256, th=512):
    """LinearMapLearner.forward.

    state:      (B, S) float
    action:     (B, A) float
    w_state_t:  (S, Hp)  = W_state^T,  Hp = round_up(hidden_dim, 128),
                 columns >= hidden_dim are zero padding.
    w_action_t: (A, Hp)  = W_action^T, same padding.
    Returns (B, hidden_dim).
    """
    B, S = state.shape
    Ba, A = action.shape
    assert B == Ba, (B, Ba)
    S_, Hp = w_state_t.shape
    A_, Hp2 = w_action_t.shape
    assert S_ == S and A_ == A and Hp == Hp2, (S_, S, A_, A, Hp, Hp2)
    if hidden_dim is None:
        hidden_dim = Hp
    assert hidden_dim <= Hp

    out_dtype = jnp.result_type(state.dtype, action.dtype,
                                w_state_t.dtype, w_action_t.dtype)
    out_bytes = B * Hp * jnp.dtype(out_dtype).itemsize
    in_bytes = (state.size * state.dtype.itemsize
                + action.size * action.dtype.itemsize
                + w_state_t.size * w_state_t.dtype.itemsize
                + w_action_t.size * w_action_t.dtype.itemsize)

    cost = pl.CostEstimate(
        flops=2 * B * (S + A) * Hp,
        transcendentals=0,
        bytes_accessed=in_bytes + out_bytes,
    )

    if in_bytes + out_bytes <= _GRIDLESS_BYTES:
        # Small-shape fast path: no grid, no pipelining machinery; whole
        # arrays live in VMEM, two MXU matmuls, one lane-dense store.
        out = pl.pallas_call(
            _map_learner_kernel,
            out_shape=jax.ShapeDtypeStruct((B, Hp), out_dtype),
            cost_estimate=cost,
        )(state, action, w_state_t, w_action_t)
    else:
        # Tiled path.  Hidden axis OUTER, batch inner: the (K, th) weight
        # tiles have index_maps independent of the fast grid axis, so they
        # stay resident in VMEM across every batch tile (no re-DMA).
        th_eff = min(th, Hp)                       # Hp is a multiple of 128.
        tb_eff = min(tb, _round_up(B, 8))
        grid = (pl.cdiv(Hp, th_eff), pl.cdiv(B, tb_eff))
        out = pl.pallas_call(
            _map_learner_kernel,
            out_shape=jax.ShapeDtypeStruct((B, Hp), out_dtype),
            grid=grid,
            in_specs=[
                pl.BlockSpec((tb_eff, S), lambda j, i: (i, 0)),
                pl.BlockSpec((tb_eff, A), lambda j, i: (i, 0)),
                pl.BlockSpec((S, th_eff), lambda j, i: (0, j)),
                pl.BlockSpec((A, th_eff), lambda j, i: (0, j)),
            ],
            out_specs=pl.BlockSpec((tb_eff, th_eff), lambda j, i: (i, j)),
            compiler_params=pltpu.CompilerParams(
                dimension_semantics=("parallel", "parallel"),
            ),
            cost_estimate=cost,
        )(state, action, w_state_t, w_action_t)

    if hidden_dim != Hp:
        out = out[:, :hidden_dim]
    return out


def init_params(key, state_dim, action_dim, hidden_dim):
    """torch.nn.Linear default init (U[-1/sqrt(in_dim), 1/sqrt(in_dim)]),
    pre-transposed and lane-padded.

    Returns:
      w_state_t:  (state_dim,  round_up(hidden_dim, 128)) = W_state^T
      w_action_t: (action_dim, round_up(hidden_dim, 128)) = W_action^T
    Columns >= hidden_dim are zero (keeps the output store lane-dense).
    """
    k1, k2 = jax.random.split(key)
    hp = _round_up(hidden_dim, LANE)
    bound_s = 1.0 / jnp.sqrt(jnp.float32(state_dim))
    bound_a = 1.0 / jnp.sqrt(jnp.float32(action_dim))
    w_state_t = jax.random.uniform(
        k1, (state_dim, hidden_dim), jnp.float32, -bound_s, bound_s)
    w_action_t = jax.random.uniform(
        k2, (action_dim, hidden_dim), jnp.float32, -bound_a, bound_a)
    if hp != hidden_dim:
        pad = ((0, 0), (0, hp - hidden_dim))
        w_state_t = jnp.pad(w_state_t, pad)
        w_action_t = jnp.pad(w_action_t, pad)
    return w_state_t, w_action_t


if __name__ == "__main__":
    # --- small demo shapes consistent with the module ---
    B, STATE_DIM, ACTION_DIM, HIDDEN_DIM = 2, 4, 4, 32

    key = jax.random.PRNGKey(0)
    k_state, k_action, k_params, k2s, k2a, k2p = jax.random.split(key, 6)

    state = jax.random.normal(k_state, (B, STATE_DIM), jnp.float32)
    action = jax.random.normal(k_action, (B, ACTION_DIM), jnp.float32)
    w_s, w_a = init_params(k_params, STATE_DIM, ACTION_DIM, HIDDEN_DIM)

    out = linear_map_learner_forward(state, action, w_s, w_a, HIDDEN_DIM)
    out = jax.block_until_ready(out)

    ref = state @ w_s[:, :HIDDEN_DIM] + action @ w_a[:, :HIDDEN_DIM]
    assert out.shape == (B, HIDDEN_DIM)
    assert jnp.allclose(out, ref, atol=1e-5, rtol=1e-5), "mismatch (small path)"

    # --- also exercise the tiled large-(B, H) path once ---
    B2, HIDDEN2 = 1024, 1024
    state2 = jax.random.normal(k2s, (B2, STATE_DIM), jnp.float32)
    action2 = jax.random.normal(k2a, (B2, ACTION_DIM), jnp.float32)
    w_s2, w_a2 = init_params(k2p, STATE_DIM, ACTION_DIM, HIDDEN2)

    out2 = linear_map_learner_forward(state2, action2, w_s2, w_a2, HIDDEN2)
    out2 = jax.block_until_ready(out2)
    ref2 = state2 @ w_s2 + action2 @ w_a2
    assert out2.shape == (B2, HIDDEN2)
    assert jnp.allclose(out2, ref2, atol=1e-4, rtol=1e-4), "mismatch (tiled path)"

    print("KERNEL_OK")
</pallas_src>

<mosaic_0001>
module attributes {stable_mosaic.version = 11 : i64} {
  func.func @_map_learner_kernel(%arg0: memref<2x4xf32, #tpu.memory_space<vmem>>, %arg1: memref<2x4xf32, #tpu.memory_space<vmem>>, %arg2: memref<4x128xf32, #tpu.memory_space<vmem>>, %arg3: memref<4x128xf32, #tpu.memory_space<vmem>>, %arg4: memref<2x128xf32, #tpu.memory_space<vmem>>) attributes {dimension_semantics = [], scalar_prefetch = 0 : i64, scratch_operands = 0 : i64, tpu.core_type = #tpu.core_type<tc>} {
    %c0 = arith.constant 0 : index
    %c0_0 = arith.constant 0 : index
    %0 = vector.load %arg0[%c0, %c0_0] : memref<2x4xf32, #tpu.memory_space<vmem>>, vector<2x4xf32>
    %c0_1 = arith.constant 0 : index
    %c0_2 = arith.constant 0 : index
    %1 = vector.load %arg2[%c0_1, %c0_2] : memref<4x128xf32, #tpu.memory_space<vmem>>, vector<4x128xf32>
    %cst = arith.constant dense<0.000000e+00> : vector<2x128xf32>
    %2 = tpu.matmul %0, %1, %cst {dimension_numbers = #tpu.dot_dimension_numbers<[1], [0], [0], [1], [0, 0, 1, 1], [], []>} : vector<2x4xf32>, vector<4x128xf32>, vector<2x128xf32> -> vector<2x128xf32>
    %c0_3 = arith.constant 0 : index
    %c0_4 = arith.constant 0 : index
    %3 = vector.load %arg1[%c0_3, %c0_4] : memref<2x4xf32, #tpu.memory_space<vmem>>, vector<2x4xf32>
    %c0_5 = arith.constant 0 : index
    %c0_6 = arith.constant 0 : index
    %4 = vector.load %arg3[%c0_5, %c0_6] : memref<4x128xf32, #tpu.memory_space<vmem>>, vector<4x128xf32>
    %cst_7 = arith.constant dense<0.000000e+00> : vector<2x128xf32>
    %5 = tpu.matmul %3, %4, %cst_7 {dimension_numbers = #tpu.dot_dimension_numbers<[1], [0], [0], [1], [0, 0, 1, 1], [], []>} : vector<2x4xf32>, vector<4x128xf32>, vector<2x128xf32> -> vector<2x128xf32>
    %6 = arith.addf %2, %5 : vector<2x128xf32>
    %c0_8 = arith.constant 0 : index
    %c0_9 = arith.constant 0 : index
    %7 = vector.load %arg4[%c0_8, %c0_9] : memref<2x128xf32, #tpu.memory_space<vmem>>, vector<2x128xf32>
    tpu.vector_store %arg4[%c0_8, %c0_9], %6 {strides = array<i32>} : memref<2x128xf32, #tpu.memory_space<vmem>>, vector<2x128xf32>,
    return
  }
}

</mosaic_0001>

<bundles_post_ra>
// kernel: tpu_custom_call.1
= control target key start
LH: loop header
LB: loop body
LE: loop exit
PB: predicated region body
PF: predicated region fallthrough
CT: control target
= control target key end

     0   :  { %9 = vsyncpa [#allocation3], 0  ;;  %s337_s0 = inlined_call_operand.hbm [shape: f32[2,4], index: 0, kind: input, shape index: {}]   ;;  %s338_s1 = inlined_call_operand.vmem [shape: f32[2,4], index: 1, kind: input, shape index: {}]   ;;  %s339_s2 = inlined_call_operand.vmem [shape: f32[4,128], index: 2, kind: input, shape index: {}]   ;;  %s340_s3 = inlined_call_operand.vmem [shape: f32[4,128], index: 3, kind: input, shape index: {}]   ;;  %s341_s4 = inlined_call_operand.hbm [shape: f32[2,128], index: 4, kind: output, shape index: {}]  }
   0x1   :  { %10 = vsyncpa [#allocation4], 0  ;;  %s275_s15 = smov [#allocation2]   ;;  %s227_s19 = scalar_lea.hbm %s337_s0, 32 }
   0x2   :  { %s17_s16 = sshll.u32 %s275_s15, 4  ;;  %p228_p0 = scmp.ne.s32.totalorder %s337_s0, %s227_s19  ;;  %s18_s16 = int_to_ptr.vmem [resolvable:$true] %s17_s16 }
   0x3   :  { %p231_p1 = scmp.lt.u32.totalorder %s227_s19, %s337_s0 }
   0x5   :  { %p233_p2 = pnand %p231_p1, %p228_p0 }
   0x7   :  { %236 = shalt.err (!%p233_p2)
}
   0x8   :  { %s237_s24 = scalar_lea.vmem %s18_s16, 32  ;;  %p242_p4 = scmp.lt.s32.totalorder %s18_s16, %s18_s16 }
   0x9   :  { %p238_p3 = scmp.ne.s32.totalorder %s18_s16, %s237_s24  ;;  %p243_p5 = scmp.lt.s32.totalorder %s237_s24, %s237_s24 }
   0xb   :  { %p244_p6 = por %p243_p5, %p242_p4 }
   0xd   :  { %p245_p7 = pnand %p244_p6, %p238_p3 }
   0xf   :  { %248 = shalt.err (!%p245_p7)
}
  0x10   :  { %20 = dma.hbm_to_vmem [thread:$0]  %s337_s0, 32, %s18_s16, [#allocation3]  }
  0x11   :  { %271 = dma.done.wait [#allocation3], 32  }
  0x12   :  { %272 = vsyncadd [#allocation3], 4294967264  ;;  %v276_v0 = vmov 0.0   ;;  %vm277_vm0 = vmmov 0   ;;  %vm38_vm1 = vcmask 1043456   ;;  %vm34_vm2 = vcmask 31744  }
  0x13   :  { %212 = vmatprep.subr.mxu1 %v276_v0  ;;  %217 = vmatprep.subr.mxu0 %v276_v0  ;;  %v33_v1 = vld [vmem:[%s340_s3] sm:$0xf]  ;;  %v30_v4 = vld [vmem:[#allocation2] sm:$0x3]  ;;  %s278_s6 = smov [#allocation5]  }
  0x14   :  { %214 = vmatprep.mubr.msk.f32.mxu1 %vm277_vm0, %v276_v0  ;;  %219 = vmatprep.mubr.msk.f32.mxu0 %vm277_vm0, %v276_v0  ;;  %v31_v2 = vld [vmem:[%s339_s2] sm:$0xf]  ;;  %s195_s7 = sshll.u32 %s278_s6, 4  ;;  %s196_s7 = int_to_ptr.vmem [resolvable:$true] %s195_s7 }
  0x15   :  { %v32_v3 = vld [vmem:[%s338_s1] sm:$0x3]  ;;  %213 = vmatpush3.msk.msra.mxu1 %vm38_vm1, %v33_v1  ;;  %218 = vmatpush3.msk.msra.mxu0 %vm38_vm1, %v31_v2  ;;  %s249_s3 = scalar_lea.vmem %s196_s7, 32  ;;  %p254_p9 = scmp.lt.s32.totalorder %s196_s7, %s196_s7 }
  0x16   :  { %215 = vmatmul.mubr.msk.f32.vlgmr.msra.gmra.mrb[0].mxu1 %vm34_vm2, %v32_v3  ;;  %220 = vmatmul.mubr.msk.f32.vlgmr.msra.gmra.mrb[0].mxu0 %vm34_vm2, %v30_v4  ;;  %p250_p8 = scmp.ne.s32.totalorder %s196_s7, %s249_s3  ;;  %p255_p10 = scmp.lt.s32.totalorder %s249_s3, %s249_s3 }
  0x18   :  { %p256_p11 = por %p255_p10, %p254_p9 }
  0x1a   :  { %p257_p12 = pnand %p256_p11, %p250_p8 }
  0xe9   :  { %v108_v5 = vpop.f32.mrb[0].mxu1  ;;  %v184_v6 = vpop.f32.mrb[0].mxu0 }
  0xea   :  { %v185_v7 = vadd.f32 %v184_v6, %v108_v5  ;;  %v216_v8 = vpop.f32.mrb[1].mxu1  ;;  %v221_v9 = vpop.f32.mrb[1].mxu0 }
  0xec   :  { %188 = vst [vmem:[#allocation5] sm:$0x3] %v185_v7 }
  0xed   :  { %260 = shalt.err (!%p257_p12)
}
  0xee   :  { %s261_s8 = scalar_lea.hbm %s341_s4, 32 }
  0xef   :  { %p262_p13 = scmp.ne.s32.totalorder %s341_s4, %s261_s8  ;;  %p265_p0 = scmp.lt.u32.totalorder %s261_s8, %s341_s4 }
  0xf1   :  { %p267_p1 = pnand %p265_p0, %p262_p13 }
  0xf3   :  { %270 = shalt.err (!%p267_p1)
}
  0xf4   :  { %198 = dma.vmem_to_hbm [thread:$0]  %s196_s7, 32, %s341_s4, [#allocation4]  }
  0xf5   :  { %273 = dma.done.wait [#allocation4], 32  }
  0xf6   :  { %274 = vsyncadd [#allocation4], 4294967264 }
  0xf7   :  { %202 = vsyncpa [#allocation3], 1 }
  0xf8   :  { %203 = vsyncpa [#allocation4], 1 }

</bundles_post_ra>
